<compile_context>
chip_gen: v7x
topology: tpu7x:2x2x1
jax: 0.10.0
libtpu: 0.0.40
codegen_flags: <defaults>
</compile_context>

<pallas_src>
import jax
import jax.numpy as jnp
from jax.experimental import pallas as pl
from jax.experimental.pallas import tpu as pltpu

EPS = 5e-11
ALPHA = 1.5
_INV = 1.0 / (ALPHA + 1.0)


def pwvqa_kernel(const_ref, logits_ref, q_emb_ref, v_emb_ref, w_ref, b_ref, out_ref):
    B, C = logits_ref.shape
    dq = q_emb_ref.shape[1]
    dv = v_emb_ref.shape[1]
    H2 = w_ref.shape[1]            # fused hidden width (2 * hidden), lane-aligned
    r1 = dq + dv                   # end of fused layer-1 rows
    r2 = r1 + H2                   # end of fused layer-2 rows
    r3 = r2 + H2                   # end of fused layer-3 rows
    r4 = r3 + H2                   # end of fused end-classifier rows

    f32 = jnp.float32
    logits = logits_ref[...].astype(f32)
    q_emb = q_emb_ref[...].astype(f32)
    v_emb = v_emb_ref[...].astype(f32)

    # ---- fused q/v MLP: block-diagonal weights, one matmul per layer ---------
    # layer 1: [q_emb | v_emb] @ blockdiag(qw1, vw1), split by weight rows
    # (two small matmuls avoid an in-kernel lane concatenation of embeddings).
    h = (jnp.dot(q_emb, w_ref[0:dq, :], preferred_element_type=f32)
         + jnp.dot(v_emb, w_ref[dq:r1, :], preferred_element_type=f32)
         + b_ref[0:1, :])
    h = jnp.maximum(h, 0.0)
    # layer 2
    h = jnp.dot(h, w_ref[r1:r2, :], preferred_element_type=f32) + b_ref[1:2, :]
    h = jnp.maximum(h, 0.0)
    # layer 3: lanes [0:C] = q_pred, [C:2C] = v_pred, remaining lanes exactly 0
    pred = jnp.dot(h, w_ref[r2:r3, :], preferred_element_type=f32) + b_ref[2:3, :]
    # fused end classifiers q_2 / v_2: lanes [0:C] = q_out, [C:2C] = v_out
    cls = jnp.dot(pred, w_ref[r3:r4, :], preferred_element_type=f32) + b_ref[3:4, :]

    q_pred = pred[:, 0:C]
    v_pred = pred[:, C:2 * C]

    # ---- 'ea' fusion ----------------------------------------------------------
    c = const_ref[0]                                    # scalar from SMEM
    zc = jax.nn.sigmoid(jnp.full((B, C), c, f32))       # sigmoid(constant)
    zk = jax.nn.sigmoid(logits)
    zq = jax.nn.sigmoid(q_pred)
    zv = jax.nn.sigmoid(v_pred)

    def ea(z1, z2):
        # 1/(alpha+1)*(log(z1+eps) + log(z2**1.5 + eps)); z2 > 0 here so
        # z2**1.5 == z2*sqrt(z2).
        return _INV * jnp.log(z1 + EPS) + _INV * jnp.log(z2 * jnp.sqrt(z2) + EPS)

    s_qv = zq + zv
    p_qv = zq * zv
    z_qkv = ea(zk * s_qv + p_qv, zk * p_qv)        # q,k,v all factual
    z_vq = ea(zc * s_qv + p_qv, zc * p_qv)         # k counterfactual
    zc2 = zc * zc
    z_nde = ea(2.0 * (zc * zq) + zc2, zc2 * zq)    # k,v counterfactual

    # ---- single lane-packed output: [all | pwvqa | q | v | nde] --------------
    out_ref[:, 0:C] = z_qkv
    out_ref[:, C:2 * C] = z_qkv - z_vq
    out_ref[:, 2 * C:3 * C] = cls[:, 0:C]
    out_ref[:, 3 * C:4 * C] = cls[:, C:2 * C]
    out_ref[:, 4 * C:5 * C] = z_nde


def pack_params(p):
    """Host-side, one-time packing of the 16 weight/bias tensors into one
    block-diagonal weight slab and one bias slab (all lanes = 2*hidden)."""
    dq, H = p["qw1"].shape
    dv = p["vw1"].shape[0]
    C = p["qw3"].shape[1]
    H2, C2 = 2 * H, 2 * C
    assert C2 <= H2, "fused layout assumes 2*output_size <= 2*hidden"
    r1 = dq + dv
    r2, r3, r4 = r1 + H2, r1 + 2 * H2, r1 + 3 * H2

    w = jnp.zeros((r4, H2), jnp.float32)
    w = w.at[0:dq, 0:H].set(p["qw1"])            # layer 1 (block-diag)
    w = w.at[dq:r1, H:H2].set(p["vw1"])
    w = w.at[r1:r1 + H, 0:H].set(p["qw2"])       # layer 2
    w = w.at[r1 + H:r2, H:H2].set(p["vw2"])
    w = w.at[r2:r2 + H, 0:C].set(p["qw3"])       # layer 3
    w = w.at[r2 + H:r3, C:C2].set(p["vw3"])
    w = w.at[r3:r3 + C, 0:C].set(p["q2w"])       # end classifiers (row-padded)
    w = w.at[r3 + C:r3 + C2, C:C2].set(p["v2w"])

    b = jnp.zeros((4, H2), jnp.float32)
    b = b.at[0, 0:H].set(p["qb1"][0]).at[0, H:H2].set(p["vb1"][0])
    b = b.at[1, 0:H].set(p["qb2"][0]).at[1, H:H2].set(p["vb2"][0])
    b = b.at[2, 0:C].set(p["qb3"][0]).at[2, C:C2].set(p["vb3"][0])
    b = b.at[3, 0:C].set(p["q2b"][0]).at[3, C:C2].set(p["v2b"][0])

    return {"w_slab": w, "b_slab": b, "constant": p["constant"].reshape(1)}


@jax.jit
def pwvqa_forward(logits, q_emb, v_emb, packed):
    """Runs the PWVQA head.  Returns a dict mirroring the PyTorch module output."""
    B, C = logits.shape
    vmem = pl.BlockSpec(memory_space=pltpu.MemorySpace.VMEM)
    smem = pl.BlockSpec(memory_space=pltpu.MemorySpace.SMEM)

    out = pl.pallas_call(
        pwvqa_kernel,
        out_shape=jax.ShapeDtypeStruct((B, 5 * C), jnp.float32),
        in_specs=[smem, vmem, vmem, vmem, vmem, vmem],
        out_specs=vmem,
    )(packed["constant"], logits, q_emb, v_emb, packed["w_slab"], packed["b_slab"])
    # TODO(synk): for large production batches, tile B with a ("parallel",)
    # grid axis (weights index_map constant) so v7x megacore shards the batch;
    # unnecessary at these sizes.

    return {
        "logits_all": out[:, 0:C],
        "logits_vq": logits,                      # NIE passthrough
        "logits_pwvqa": out[:, C:2 * C],          # TIE
        "logits_q": out[:, 2 * C:3 * C],
        "logits_v": out[:, 3 * C:4 * C],
        "z_nde": out[:, 4 * C:5 * C],
    }


@jax.jit
def reference_forward(logits, q_emb, v_emb, p):
    """Pure-JAX reference mirroring the PyTorch forward (for correctness check)."""
    def mlp3(x, w1, b1, w2, b2, w3, b3):
        h = jnp.maximum(x @ w1 + b1, 0.0)
        h = jnp.maximum(h @ w2 + b2, 0.0)
        return h @ w3 + b3

    def ea_fusion(z_k, z_q, z_v):
        z1 = z_k * z_q + z_k * z_v + z_q * z_v
        z2 = z_k * z_q * z_v
        return _INV * jnp.log(z1 + EPS) + _INV * jnp.log(z2 ** ALPHA + EPS)

    q_pred = mlp3(q_emb, p["qw1"], p["qb1"], p["qw2"], p["qb2"], p["qw3"], p["qb3"])
    v_pred = mlp3(v_emb, p["vw1"], p["vb1"], p["vw2"], p["vb2"], p["vw3"], p["vb3"])
    zk, zq, zv = jax.nn.sigmoid(logits), jax.nn.sigmoid(q_pred), jax.nn.sigmoid(v_pred)
    zc = jax.nn.sigmoid(p["constant"]) * jnp.ones_like(logits)
    z_qkv = ea_fusion(zk, zq, zv)
    z_vq = ea_fusion(zc, zq, zv)
    z_nde = ea_fusion(zc, zq, zc)
    return {
        "logits_all": z_qkv,
        "logits_vq": logits,
        "logits_pwvqa": z_qkv - z_vq,
        "logits_q": q_pred @ p["q2w"] + p["q2b"],
        "logits_v": v_pred @ p["v2w"] + p["v2b"],
        "z_nde": z_nde,
    }


def init_params(key, dq, dv, hidden, c):
    ks = jax.random.split(key, 8)
    s = 0.1

    def lin(k, din, dout):
        kw, kb = jax.random.split(k)
        w = jax.random.normal(kw, (din, dout), jnp.float32) * s
        b = jax.random.normal(kb, (1, dout), jnp.float32) * s
        return w, b

    qw1, qb1 = lin(ks[0], dq, hidden)
    qw2, qb2 = lin(ks[1], hidden, hidden)
    qw3, qb3 = lin(ks[2], hidden, c)
    vw1, vb1 = lin(ks[3], dv, hidden)
    vw2, vb2 = lin(ks[4], hidden, hidden)
    vw3, vb3 = lin(ks[5], hidden, c)
    q2w, q2b = lin(ks[6], c, c)
    v2w, v2b = lin(ks[7], c, c)
    constant = jnp.zeros((1,), jnp.float32)   # nn.Parameter(torch.tensor(0.0))
    return dict(qw1=qw1, qb1=qb1, qw2=qw2, qb2=qb2, qw3=qw3, qb3=qb3,
                vw1=vw1, vb1=vb1, vw2=vw2, vb2=vb2, vw3=vw3, vb3=vb3,
                q2w=q2w, q2b=q2b, v2w=v2w, v2b=v2b, constant=constant)


if __name__ == "__main__":
    B, C, DQ, DV, H = 8, 32, 48, 40, 64

    key = jax.random.PRNGKey(0)
    k_log, k_q, k_v, k_p = jax.random.split(key, 4)
    logits = jax.random.normal(k_log, (B, C), jnp.float32)
    q_emb = jax.random.normal(k_q, (B, DQ), jnp.float32)
    v_emb = jax.random.normal(k_v, (B, DV), jnp.float32)
    params = init_params(k_p, DQ, DV, H, C)
    packed = pack_params(params)

    out = pwvqa_forward(logits, q_emb, v_emb, packed)
    jax.block_until_ready(out)

    ref = reference_forward(logits, q_emb, v_emb, params)
    jax.block_until_ready(ref)
    for name in ("logits_all", "logits_vq", "logits_pwvqa", "logits_q", "logits_v", "z_nde"):
        a, b = out[name], ref[name]
        assert a.shape == (B, C) and a.dtype == jnp.float32, name
        assert jnp.allclose(a, b, atol=1e-4, rtol=1e-4), name

    print("KERNEL_OK")
</pallas_src>

<mosaic_0001>
module attributes {stable_mosaic.version = 11 : i64} {
  func.func @pwvqa_kernel(%arg0: memref<1xf32, #tpu.memory_space<smem>>, %arg1: memref<8x32xf32, #tpu.memory_space<vmem>>, %arg2: memref<8x48xf32, #tpu.memory_space<vmem>>, %arg3: memref<8x40xf32, #tpu.memory_space<vmem>>, %arg4: memref<472x128xf32, #tpu.memory_space<vmem>>, %arg5: memref<4x128xf32, #tpu.memory_space<vmem>>, %arg6: memref<8x160xf32, #tpu.memory_space<vmem>>) attributes {dimension_semantics = [], scalar_prefetch = 0 : i64, scratch_operands = 0 : i64, tpu.core_type = #tpu.core_type<tc>} {
    %c0 = arith.constant 0 : index
    %c0_0 = arith.constant 0 : index
    %0 = vector.load %arg1[%c0, %c0_0] : memref<8x32xf32, #tpu.memory_space<vmem>>, vector<8x32xf32>
    %c0_1 = arith.constant 0 : index
    %c0_2 = arith.constant 0 : index
    %1 = vector.load %arg2[%c0_1, %c0_2] : memref<8x48xf32, #tpu.memory_space<vmem>>, vector<8x48xf32>
    %c0_3 = arith.constant 0 : index
    %c0_4 = arith.constant 0 : index
    %2 = vector.load %arg3[%c0_3, %c0_4] : memref<8x40xf32, #tpu.memory_space<vmem>>, vector<8x40xf32>
    %c0_5 = arith.constant 0 : index
    %c0_6 = arith.constant 0 : index
    %3 = vector.load %arg4[%c0_5, %c0_6] : memref<472x128xf32, #tpu.memory_space<vmem>>, vector<48x128xf32>
    %cst = arith.constant dense<0.000000e+00> : vector<8x128xf32>
    %4 = tpu.matmul %1, %3, %cst {dimension_numbers = #tpu.dot_dimension_numbers<[1], [0], [0], [1], [0, 0, 1, 1], [], []>} : vector<8x48xf32>, vector<48x128xf32>, vector<8x128xf32> -> vector<8x128xf32>
    %c48 = arith.constant 48 : index
    %c0_7 = arith.constant 0 : index
    %5 = vector.load %arg4[%c48, %c0_7] : memref<472x128xf32, #tpu.memory_space<vmem>>, vector<40x128xf32>
    %cst_8 = arith.constant dense<0.000000e+00> : vector<8x128xf32>
    %6 = tpu.matmul %2, %5, %cst_8 {dimension_numbers = #tpu.dot_dimension_numbers<[1], [0], [0], [1], [0, 0, 1, 1], [], []>} : vector<8x40xf32>, vector<40x128xf32>, vector<8x128xf32> -> vector<8x128xf32>
    %7 = arith.addf %4, %6 : vector<8x128xf32>
    %c0_9 = arith.constant 0 : index
    %c0_10 = arith.constant 0 : index
    %8 = vector.load %arg5[%c0_9, %c0_10] : memref<4x128xf32, #tpu.memory_space<vmem>>, vector<1x128xf32>
    %9 = vector.broadcast %8 : vector<1x128xf32> to vector<8x128xf32>
    %10 = arith.addf %7, %9 : vector<8x128xf32>
    %cst_11 = arith.constant 0.000000e+00 : f32
    %11 = vector.broadcast %cst_11 : f32 to vector<8x128xf32>
    %12 = arith.maximumf %10, %11 : vector<8x128xf32>
    %c88 = arith.constant 88 : index
    %c0_12 = arith.constant 0 : index
    %13 = vector.load %arg4[%c88, %c0_12] : memref<472x128xf32, #tpu.memory_space<vmem>>, vector<128x128xf32>
    %cst_13 = arith.constant dense<0.000000e+00> : vector<8x128xf32>
    %14 = tpu.matmul %12, %13, %cst_13 {dimension_numbers = #tpu.dot_dimension_numbers<[1], [0], [0], [1], [0, 0, 1, 1], [], []>} : vector<8x128xf32>, vector<128x128xf32>, vector<8x128xf32> -> vector<8x128xf32>
    %c1 = arith.constant 1 : index
    %c0_14 = arith.constant 0 : index
    %15 = vector.load %arg5[%c1, %c0_14] : memref<4x128xf32, #tpu.memory_space<vmem>>, vector<1x128xf32>
    %16 = vector.broadcast %15 : vector<1x128xf32> to vector<8x128xf32>
    %17 = arith.addf %14, %16 : vector<8x128xf32>
    %cst_15 = arith.constant 0.000000e+00 : f32
    %18 = vector.broadcast %cst_15 : f32 to vector<8x128xf32>
    %19 = arith.maximumf %17, %18 : vector<8x128xf32>
    %c216 = arith.constant 216 : index
    %c0_16 = arith.constant 0 : index
    %20 = vector.load %arg4[%c216, %c0_16] : memref<472x128xf32, #tpu.memory_space<vmem>>, vector<128x128xf32>
    %cst_17 = arith.constant dense<0.000000e+00> : vector<8x128xf32>
    %21 = tpu.matmul %19, %20, %cst_17 {dimension_numbers = #tpu.dot_dimension_numbers<[1], [0], [0], [1], [0, 0, 1, 1], [], []>} : vector<8x128xf32>, vector<128x128xf32>, vector<8x128xf32> -> vector<8x128xf32>
    %c2 = arith.constant 2 : index
    %c0_18 = arith.constant 0 : index
    %22 = vector.load %arg5[%c2, %c0_18] : memref<4x128xf32, #tpu.memory_space<vmem>>, vector<1x128xf32>
    %23 = vector.broadcast %22 : vector<1x128xf32> to vector<8x128xf32>
    %24 = arith.addf %21, %23 : vector<8x128xf32>
    %c344 = arith.constant 344 : index
    %c0_19 = arith.constant 0 : index
    %25 = vector.load %arg4[%c344, %c0_19] : memref<472x128xf32, #tpu.memory_space<vmem>>, vector<128x128xf32>
    %cst_20 = arith.constant dense<0.000000e+00> : vector<8x128xf32>
    %26 = tpu.matmul %24, %25, %cst_20 {dimension_numbers = #tpu.dot_dimension_numbers<[1], [0], [0], [1], [0, 0, 1, 1], [], []>} : vector<8x128xf32>, vector<128x128xf32>, vector<8x128xf32> -> vector<8x128xf32>
    %c3 = arith.constant 3 : index
    %c0_21 = arith.constant 0 : index
    %27 = vector.load %arg5[%c3, %c0_21] : memref<4x128xf32, #tpu.memory_space<vmem>>, vector<1x128xf32>
    %28 = vector.broadcast %27 : vector<1x128xf32> to vector<8x128xf32>
    %29 = arith.addf %26, %28 : vector<8x128xf32>
    %30 = vector.extract_strided_slice %24 {offsets = [0, 0], sizes = [8, 32], strides = [1, 1]} : vector<8x128xf32> to vector<8x32xf32>
    %31 = vector.extract_strided_slice %24 {offsets = [0, 32], sizes = [8, 32], strides = [1, 1]} : vector<8x128xf32> to vector<8x32xf32>
    %c0_22 = arith.constant 0 : index
    %32 = memref.load %arg0[%c0_22] : memref<1xf32, #tpu.memory_space<smem>>
    %33 = vector.broadcast %32 : f32 to vector<8x32xf32>
    %34 = arith.negf %33 : vector<8x32xf32>
    %35 = math.exp %34 : vector<8x32xf32>
    %cst_23 = arith.constant 1.000000e+00 : f32
    %36 = vector.broadcast %cst_23 : f32 to vector<8x32xf32>
    %37 = arith.addf %36, %35 : vector<8x32xf32>
    %38 = arith.divf %36, %37 : vector<8x32xf32>
    %39 = arith.negf %0 : vector<8x32xf32>
    %40 = math.exp %39 : vector<8x32xf32>
    %cst_24 = arith.constant 1.000000e+00 : f32
    %41 = vector.broadcast %cst_24 : f32 to vector<8x32xf32>
    %42 = arith.addf %41, %40 : vector<8x32xf32>
    %43 = arith.divf %41, %42 : vector<8x32xf32>
    %44 = arith.negf %30 : vector<8x32xf32>
    %45 = math.exp %44 : vector<8x32xf32>
    %cst_25 = arith.constant 1.000000e+00 : f32
    %46 = vector.broadcast %cst_25 : f32 to vector<8x32xf32>
    %47 = arith.addf %46, %45 : vector<8x32xf32>
    %48 = arith.divf %46, %47 : vector<8x32xf32>
    %49 = arith.negf %31 : vector<8x32xf32>
    %50 = math.exp %49 : vector<8x32xf32>
    %cst_26 = arith.constant 1.000000e+00 : f32
    %51 = vector.broadcast %cst_26 : f32 to vector<8x32xf32>
    %52 = arith.addf %51, %50 : vector<8x32xf32>
    %53 = arith.divf %51, %52 : vector<8x32xf32>
    %54 = arith.addf %48, %53 : vector<8x32xf32>
    %55 = arith.mulf %48, %53 : vector<8x32xf32>
    %56 = arith.mulf %43, %54 : vector<8x32xf32>
    %57 = arith.addf %56, %55 : vector<8x32xf32>
    %58 = arith.mulf %43, %55 : vector<8x32xf32>
    %cst_27 = arith.constant 5.000000e-11 : f32
    %59 = vector.broadcast %cst_27 : f32 to vector<8x32xf32>
    %60 = arith.addf %57, %59 : vector<8x32xf32>
    %61 = math.log %60 : vector<8x32xf32>
    %cst_28 = arith.constant 4.000000e-01 : f32
    %62 = vector.broadcast %cst_28 : f32 to vector<8x32xf32>
    %63 = arith.mulf %62, %61 : vector<8x32xf32>
    %64 = math.sqrt %58 : vector<8x32xf32>
    %65 = arith.mulf %58, %64 : vector<8x32xf32>
    %cst_29 = arith.constant 5.000000e-11 : f32
    %66 = vector.broadcast %cst_29 : f32 to vector<8x32xf32>
    %67 = arith.addf %65, %66 : vector<8x32xf32>
    %68 = math.log %67 : vector<8x32xf32>
    %cst_30 = arith.constant 4.000000e-01 : f32
    %69 = vector.broadcast %cst_30 : f32 to vector<8x32xf32>
    %70 = arith.mulf %69, %68 : vector<8x32xf32>
    %71 = arith.addf %63, %70 : vector<8x32xf32>
    %72 = arith.mulf %38, %54 : vector<8x32xf32>
    %73 = arith.addf %72, %55 : vector<8x32xf32>
    %74 = arith.mulf %38, %55 : vector<8x32xf32>
    %cst_31 = arith.constant 5.000000e-11 : f32
    %75 = vector.broadcast %cst_31 : f32 to vector<8x32xf32>
    %76 = arith.addf %73, %75 : vector<8x32xf32>
    %77 = math.log %76 : vector<8x32xf32>
    %cst_32 = arith.constant 4.000000e-01 : f32
    %78 = vector.broadcast %cst_32 : f32 to vector<8x32xf32>
    %79 = arith.mulf %78, %77 : vector<8x32xf32>
    %80 = math.sqrt %74 : vector<8x32xf32>
    %81 = arith.mulf %74, %80 : vector<8x32xf32>
    %cst_33 = arith.constant 5.000000e-11 : f32
    %82 = vector.broadcast %cst_33 : f32 to vector<8x32xf32>
    %83 = arith.addf %81, %82 : vector<8x32xf32>
    %84 = math.log %83 : vector<8x32xf32>
    %cst_34 = arith.constant 4.000000e-01 : f32
    %85 = vector.broadcast %cst_34 : f32 to vector<8x32xf32>
    %86 = arith.mulf %85, %84 : vector<8x32xf32>
    %87 = arith.addf %79, %86 : vector<8x32xf32>
    %88 = arith.mulf %38, %38 : vector<8x32xf32>
    %89 = arith.mulf %38, %48 : vector<8x32xf32>
    %cst_35 = arith.constant 2.000000e+00 : f32
    %90 = vector.broadcast %cst_35 : f32 to vector<8x32xf32>
    %91 = arith.mulf %90, %89 : vector<8x32xf32>
    %92 = arith.addf %91, %88 : vector<8x32xf32>
    %93 = arith.mulf %88, %48 : vector<8x32xf32>
    %cst_36 = arith.constant 5.000000e-11 : f32
    %94 = vector.broadcast %cst_36 : f32 to vector<8x32xf32>
    %95 = arith.addf %92, %94 : vector<8x32xf32>
    %96 = math.log %95 : vector<8x32xf32>
    %cst_37 = arith.constant 4.000000e-01 : f32
    %97 = vector.broadcast %cst_37 : f32 to vector<8x32xf32>
    %98 = arith.mulf %97, %96 : vector<8x32xf32>
    %99 = math.sqrt %93 : vector<8x32xf32>
    %100 = arith.mulf %93, %99 : vector<8x32xf32>
    %cst_38 = arith.constant 5.000000e-11 : f32
    %101 = vector.broadcast %cst_38 : f32 to vector<8x32xf32>
    %102 = arith.addf %100, %101 : vector<8x32xf32>
    %103 = math.log %102 : vector<8x32xf32>
    %cst_39 = arith.constant 4.000000e-01 : f32
    %104 = vector.broadcast %cst_39 : f32 to vector<8x32xf32>
    %105 = arith.mulf %104, %103 : vector<8x32xf32>
    %106 = arith.addf %98, %105 : vector<8x32xf32>
    %c0_40 = arith.constant 0 : index
    %c0_41 = arith.constant 0 : index
    %107 = vector.load %arg6[%c0_40, %c0_41] : memref<8x160xf32, #tpu.memory_space<vmem>>, vector<8x32xf32>
    tpu.vector_store %arg6[%c0_40, %c0_41], %71 {strides = array<i32>} : memref<8x160xf32, #tpu.memory_space<vmem>>, vector<8x32xf32>,
    %108 = arith.subf %71, %87 : vector<8x32xf32>
    %c0_42 = arith.constant 0 : index
    %c32 = arith.constant 32 : index
    %109 = vector.load %arg6[%c0_42, %c32] : memref<8x160xf32, #tpu.memory_space<vmem>>, vector<8x32xf32>
    tpu.vector_store %arg6[%c0_42, %c32], %108 {strides = array<i32>} : memref<8x160xf32, #tpu.memory_space<vmem>>, vector<8x32xf32>,
    %110 = vector.extract_strided_slice %29 {offsets = [0, 0], sizes = [8, 32], strides = [1, 1]} : vector<8x128xf32> to vector<8x32xf32>
    %c0_43 = arith.constant 0 : index
    %c64 = arith.constant 64 : index
    %111 = vector.load %arg6[%c0_43, %c64] : memref<8x160xf32, #tpu.memory_space<vmem>>, vector<8x32xf32>
    tpu.vector_store %arg6[%c0_43, %c64], %110 {strides = array<i32>} : memref<8x160xf32, #tpu.memory_space<vmem>>, vector<8x32xf32>,
    %112 = vector.extract_strided_slice %29 {offsets = [0, 32], sizes = [8, 32], strides = [1, 1]} : vector<8x128xf32> to vector<8x32xf32>
    %c0_44 = arith.constant 0 : index
    %c96 = arith.constant 96 : index
    %113 = vector.load %arg6[%c0_44, %c96] : memref<8x160xf32, #tpu.memory_space<vmem>>, vector<8x32xf32>
    tpu.vector_store %arg6[%c0_44, %c96], %112 {strides = array<i32>} : memref<8x160xf32, #tpu.memory_space<vmem>>, vector<8x32xf32>,
    %c0_45 = arith.constant 0 : index
    %c128 = arith.constant 128 : index
    %114 = vector.load %arg6[%c0_45, %c128] : memref<8x160xf32, #tpu.memory_space<vmem>>, vector<8x32xf32>
    tpu.vector_store %arg6[%c0_45, %c128], %106 {strides = array<i32>} : memref<8x160xf32, #tpu.memory_space<vmem>>, vector<8x32xf32>,
    return
  }
}

</mosaic_0001>

<bundles_post_ra>
// kernel: pwvqa_forward.1
= control target key start
LH: loop header
LB: loop body
LE: loop exit
PB: predicated region body
PF: predicated region fallthrough
CT: control target
= control target key end

     0   :  { %12 = vsyncpa [#allocation4], 0  ;;  %s1177_s0 = inlined_call_operand.<no memory space> [shape: f32[1], index: 0, kind: input, shape index: {}]   ;;  %s1178_s1 = inlined_call_operand.vmem [shape: f32[8,32], index: 1, kind: input, shape index: {}]   ;;  %s1179_s2 = inlined_call_operand.hbm [shape: f32[8,48], index: 2, kind: input, shape index: {}]   ;;  %s1180_s3 = inlined_call_operand.hbm [shape: f32[8,40], index: 3, kind: input, shape index: {}]   ;;  %s1181_s4 = inlined_call_operand.hbm [shape: f32[472,128], index: 4, kind: input, shape index: {}]   ;;  %s1182_s5 = inlined_call_operand.vmem [shape: f32[4,128], index: 5, kind: input, shape index: {}]   ;;  %s1183_s6 = inlined_call_operand.vmem [shape: f32[8,160], index: 6, kind: output, shape index: {}]  }
   0x1   :  { %13 = vsyncpa [#allocation6], 0  ;;  %s1020_s21 = smov [#allocation5]   ;;  %s1021_s23 = smov [#allocation3]  }
   0x2   :  { %s34_s22 = sshll.u32 %s1020_s21, 4  ;;  %s24_s24 = sshll.u32 %s1021_s23, 4  ;;  %s35_s22 = int_to_ptr.vmem [resolvable:$true] %s34_s22  ;;  %s25_s24 = int_to_ptr.vmem [resolvable:$true] %s24_s24 }
   0x3   :  { %s950_s27 = scalar_lea.hbm %s1180_s3, 128 }
   0x4   :  { %p951_p0 = scmp.ne.s32.totalorder %s1180_s3, %s950_s27  ;;  %p954_p1 = scmp.lt.u32.totalorder %s950_s27, %s1180_s3 }
   0x6   :  { %p956_p2 = pnand %p954_p1, %p951_p0 }
   0x8   :  { %959 = shalt.err (!%p956_p2)
}
   0x9   :  { %s960_s8 = scalar_lea.vmem %s35_s22, 128  ;;  %p965_p4 = scmp.lt.s32.totalorder %s35_s22, %s35_s22 }
   0xa   :  { %p961_p3 = scmp.ne.s32.totalorder %s35_s22, %s960_s8  ;;  %p966_p5 = scmp.lt.s32.totalorder %s960_s8, %s960_s8 }
   0xc   :  { %p967_p6 = por %p966_p5, %p965_p4 }
   0xe   :  { %p968_p7 = pnand %p967_p6, %p961_p3 }
  0x10   :  { %971 = shalt.err (!%p968_p7)
}
  0x11   :  { %37 = dma.hbm_to_vmem [thread:$0]  %s1180_s3, 128, %s35_s22, [#allocation6]  }
  0x12   :  { %s972_s13 = scalar_lea.hbm %s1179_s2, 128 }
  0x13   :  { %p973_p8 = scmp.ne.s32.totalorder %s1179_s2, %s972_s13  ;;  %p976_p9 = scmp.lt.u32.totalorder %s972_s13, %s1179_s2 }
  0x15   :  { %p978_p10 = pnand %p976_p9, %p973_p8 }
  0x17   :  { %981 = shalt.err (!%p978_p10)
}
  0x18   :  { %s982_s18 = scalar_lea.vmem %s25_s24, 128  ;;  %p987_p12 = scmp.lt.s32.totalorder %s25_s24, %s25_s24 }
  0x19   :  { %p983_p11 = scmp.ne.s32.totalorder %s25_s24, %s982_s18  ;;  %p988_p13 = scmp.lt.s32.totalorder %s982_s18, %s982_s18 }
  0x1b   :  { %p989_p0 = por %p988_p13, %p987_p12 }
  0x1d   :  { %p990_p1 = pnand %p989_p0, %p983_p11 }
  0x1f   :  { %993 = shalt.err (!%p990_p1)
}
  0x20   :  { %27 = dma.hbm_to_vmem [thread:$0]  %s1179_s2, 128, %s25_s24, [#allocation4]  }
  0x21   :  { %s1022_s20 = smov [#allocation7]   ;;  %s994_s25 = scalar_lea.hbm %s1181_s4, 7552 }
  0x22   :  { %s43_s21 = sshll.u32 %s1022_s20, 4  ;;  %p995_p2 = scmp.ne.s32.totalorder %s1181_s4, %s994_s25  ;;  %s44_s21 = int_to_ptr.vmem [resolvable:$true] %s43_s21 }
  0x23   :  { %p998_p3 = scmp.lt.u32.totalorder %s994_s25, %s1181_s4 }
  0x25   :  { %p1000_p4 = pnand %p998_p3, %p995_p2 }
  0x27   :  { %1003 = shalt.err (!%p1000_p4)
}
  0x28   :  { %s1004_s30 = scalar_lea.vmem %s44_s21, 7552  ;;  %p1009_p6 = scmp.lt.s32.totalorder %s44_s21, %s44_s21 }
  0x29   :  { %p1005_p5 = scmp.ne.s32.totalorder %s44_s21, %s1004_s30  ;;  %p1010_p7 = scmp.lt.s32.totalorder %s1004_s30, %s1004_s30 }
  0x2b   :  { %p1011_p8 = por %p1010_p7, %p1009_p6 }
  0x2d   :  { %p1012_p9 = pnand %p1011_p8, %p1005_p5 }
  0x2f   :  { %1015 = shalt.err (!%p1012_p9)
}
  0x30   :  { %s1023_s2 = smov 128   ;;  %s1024_s24 = smov 8  }
  0x31   :  { %49 = dma.hbm_to_vmem [thread:$0]  %s1181_s4, 7552, %s44_s21, [#allocation6], %s1023_s2, %s1023_s2, %s1024_s24  }
  0x32   :  { %1016 = dma.done.wait [#allocation4], 128  }
  0x33   :  { %1017 = vsyncadd [#allocation4], 4294967168 }
  0x34   :  { %1018 = dma.done.wait [#allocation6], 7680  }
  0x35   :  { %1019 = vsyncadd [#allocation6], 4294959616  ;;  %v1025_v0 = vmov 0.0|0.0   ;;  %vm1026_vm0 = vmmov 0   ;;  %v1027_v1 = vmov 0.0   ;;  %v70_v2 = vld [vmem:[#allocation7 + $0x30] sm:$0xff] }
  0x36   :  { %822 = vmatprep.subr.bf16.mxu1 %v1025_v0  ;;  %699 = vmatprep.mubr.msk.f32.mxu1 %vm1026_vm0, %v1027_v1  ;;  %v71_v3 = vld [vmem:[#allocation7 + $0x38] sm:$0xff]  ;;  %v72_v4 = vld [vmem:[#allocation7 + $0x40] sm:$0xff]  ;;  %v73_v6 = vld [vmem:[#allocation7 + $0x48] sm:$0xff]  ;;  %vm75_vm1 = vcmask 326656   ;;  %vm149_vm2 = vcmask 392192   ;;  %vm592_vm5 = vcmask 261120  }
  0x37   :  { %837 = vmatprep.subr.bf16.mxu0 %v1025_v0  ;;  %749 = vmatprep.mubr.msk.f32.mxu0 %vm1026_vm0, %v1027_v1  ;;  %v823_v5 = vpack.c.bf16 %v71_v3, %v70_v2  ;;  %v826_v7 = vpack.c.bf16 %v73_v6, %v72_v4  ;;  %v230_v8 = vld [vmem:[#allocation7 + $0x58] sm:$0xff]  ;;  %v231_v9 = vld [vmem:[#allocation7 + $0x60] sm:$0xff]  ;;  %v232_v11 = vld [vmem:[#allocation7 + $0x68] sm:$0xff]  ;;  %s1029_s20 = smov 32   ;;  %s1030_s23 = smov 64   ;;  %vm599_vm10 = vcmask 523520  }
  0x38   :  { %v838_v10 = vpack.c.bf16 %v231_v9, %v230_v8  ;;  %v233_v12 = vld [vmem:[#allocation7 + $0x70] sm:$0xff]  ;;  %v64_v13 = vld [vmem:[#allocation7] sm:$0xff]  ;;  %v65_v14 = vld [vmem:[#allocation7 + $0x8] sm:$0xff]  ;;  %vm605_vm11 = vcmask 785920   ;;  %vm607_vm12 = vcmask 1048320  }
  0x39   :  { %824 = vmatpush3.bf16.msra.mxu1 %v823_v5  ;;  %v841_v15 = vpack.c.bf16 %v233_v12, %v232_v11  ;;  %v74_v16 = vld [vmem:[#allocation7 + $0x50] sm:$0xff]  ;;  %v234_v17 = vld [vmem:[#allocation7 + $0x78] sm:$0xff]  ;;  %v235_v18 = vld [vmem:[#allocation7 + $0x80] sm:$0xff]  ;;  %v829_v20 = vpack.c.bf16 %v65_v14, %v64_v13 }
  0x3a   :  { %825 = vmatprep.subr.bf16.mxu1 %v1025_v0  ;;  %839 = vmatpush3.bf16.msra.mxu0 %v838_v10  ;;  %v63_v19 = vld [vmem:[#allocation5] sm:$0xff]  ;;  %v66_v21 = vld [vmem:[#allocation7 + $0x10] sm:$0xff]  ;;  %v844_v23 = vpack.c.bf16 %v235_v18, %v234_v17  ;;  %v68_v25 = vld [vmem:[#allocation7 + $0x20] sm:$0xff] }
  0x3b   :  { %840 = vmatprep.subr.bf16.mxu0 %v1025_v0  ;;  %v67_v22 = vld [vmem:[#allocation7 + $0x18] sm:$0xff]  ;;  %v69_v26 = vld [vmem:[#allocation7 + $0x28] sm:$0xff]  ;;  %v62_v28 = vld [vmem:[#allocation3] sm:$0xff] }
  0x3c   :  { %v832_v24 = vpack.c.bf16 %v67_v22, %v66_v21  ;;  %v835_v27 = vpack.c.bf16 %v69_v26, %v68_v25  ;;  %v236_v29 = vld [vmem:[#allocation7 + $0x88] sm:$0xff]  ;;  %v237_v30 = vld [vmem:[#allocation7 + $0x90] sm:$0xff]  ;;  %v238_v32 = vld [vmem:[#allocation7 + $0x98] sm:$0xff] }
  0x3d   :  { %827 = vmatpush3.bf16.msra.mxu1 %v826_v7  ;;  %v847_v31 = vpack.c.bf16 %v237_v30, %v236_v29  ;;  %v239_v33 = vld [vmem:[#allocation7 + $0xa0] sm:$0xff]  ;;  %v240_v34 = vld [vmem:[#allocation7 + $0xa8] sm:$0xff]  ;;  %v241_v36 = vld [vmem:[#allocation7 + $0xb0] sm:$0xff] }
  0x3e   :  { %697 = vmatprep.subr.mxu1 %v1027_v1  ;;  %842 = vmatpush3.bf16.msra.mxu0 %v841_v15  ;;  %v850_v35 = vpack.c.bf16 %v239_v33, %v238_v32  ;;  %v853_v37 = vpack.c.bf16 %v241_v36, %v240_v34  ;;  %v242_v38 = vld [vmem:[#allocation7 + $0xb8] sm:$0xff]  ;;  %v243_v39 = vld [vmem:[#allocation7 + $0xc0] sm:$0xff]  ;;  %v244_v41 = vld [vmem:[#allocation7 + $0xc8] sm:$0xff] }
  0x3f   :  { %843 = vmatprep.subr.bf16.mxu0 %v1025_v0  ;;  %v856_v40 = vpack.c.bf16 %v243_v39, %v242_v38  ;;  %v245_v42 = vld [vmem:[#allocation7 + $0xd0] sm:$0xff]  ;;  %v322_v44 = vld [vmem:[#allocation7 + $0xd8] sm:$0xff]  ;;  %v323_v45 = vld [vmem:[#allocation7 + $0xe0] sm:$0xff] }
  0x40   :  { %v859_v43 = vpack.c.bf16 %v245_v42, %v244_v41  ;;  %v324_v46 = vld [vmem:[#allocation7 + $0xe8] sm:$0xff]  ;;  %v862_v47 = vpack.c.bf16 %v323_v45, %v322_v44  ;;  %v325_v48 = vld [vmem:[#allocation7 + $0xf0] sm:$0xff]  ;;  %v326_v50 = vld [vmem:[#allocation7 + $0xf8] sm:$0xff]  ;;  %v505_v42 = vstv %s1177_s0  ;;  %s1028_s0 = smov 96  }
  0x41   :  { %698 = vmatpush3.msra.mxu1 %v74_v16  ;;  %v865_v49 = vpack.c.bf16 %v325_v48, %v324_v46  ;;  %v327_v51 = vld [vmem:[#allocation7 + $0x100] sm:$0xff]  ;;  %v328_v53 = vld [vmem:[#allocation7 + $0x108] sm:$0xff]  ;;  %v329_v54 = vld [vmem:[#allocation7 + $0x110] sm:$0xff] }
  0x42   :  { %700 = vmatmul.mubr.msk.f32.vlgmr.msra.gmra.mrb[0].mxu1 %vm75_vm1, %v63_v19  ;;  %828 = vmatprep.subr.bf16.mxu1 %v1025_v0  ;;  %v868_v52 = vpack.c.bf16 %v327_v51, %v326_v50  ;;  %v871_v55 = vpack.c.bf16 %v329_v54, %v328_v53  ;;  %v330_v56 = vld [vmem:[#allocation7 + $0x118] sm:$0xff]  ;;  %v331_v57 = vld [vmem:[#allocation7 + $0x120] sm:$0xff]  ;;  %v332_v59 = vld [vmem:[#allocation7 + $0x128] sm:$0xff] }
  0x43   :  { %830 = vmatpush3.bf16.msra.mxu1 %v829_v20  ;;  %714 = vmatprep.mubr.msk.f32.mxu1 %vm1026_vm0, %v1027_v1  ;;  %v874_v58 = vpack.c.bf16 %v331_v57, %v330_v56  ;;  %v333_v60 = vld [vmem:[#allocation7 + $0x130] sm:$0xff]  ;;  %v334_v62 = vld [vmem:[#allocation7 + $0x138] sm:$0xff]  ;;  %v335_v63 = vld [vmem:[#allocation7 + $0x140] sm:$0xff] }
  0x44   :  { %831 = vmatprep.subr.bf16.mxu1 %v1025_v0  ;;  %845 = vmatpush3.bf16.msra.mxu0 %v844_v23  ;;  %v877_v61 = vpack.c.bf16 %v333_v60, %v332_v59  ;;  %v880_v2 = vpack.c.bf16 %v335_v63, %v334_v62  ;;  %v618_v6 = vld [vmem:[%s1182_s5] ss:$0 sm:$0xff]  ;;  %v336_v11 = vld [vmem:[#allocation7 + $0x148] sm:$0xff]  ;;  %v413_v14 = vld [vmem:[#allocation7 + $0x158] sm:$0xff] }
  0x45   :  { %846 = vmatprep.subr.bf16.mxu0 %v1025_v0  ;;  %v337_v12 = vld [vmem:[#allocation7 + $0x150] sm:$0xff]  ;;  %v414_v15 = vld [vmem:[#allocation7 + $0x160] sm:$0xff]  ;;  %v415_v16 = vld [vmem:[#allocation7 + $0x168] sm:$0xff] }
  0x46   :  { %v883_v13 = vpack.c.bf16 %v337_v12, %v336_v11  ;;  %v886_v17 = vpack.c.bf16 %v414_v15, %v413_v14  ;;  %v416_v18 = vld [vmem:[#allocation7 + $0x170] sm:$0xff]  ;;  %v417_v20 = vld [vmem:[#allocation7 + $0x178] sm:$0xff]  ;;  %v418_v21 = vld [vmem:[#allocation7 + $0x180] sm:$0xff] }
  0x47   :  { %833 = vmatpush3.bf16.msra.mxu1 %v832_v24  ;;  %v889_v19 = vpack.c.bf16 %v416_v18, %v415_v16  ;;  %v892_v22 = vpack.c.bf16 %v418_v21, %v417_v20  ;;  %v420_v23 = vld [vmem:[#allocation7 + $0x190] sm:$0xff]  ;;  %v421_v25 = vld [vmem:[#allocation7 + $0x198] sm:$0xff]  ;;  %v422_v26 = vld [vmem:[#allocation7 + $0x1a0] sm:$0xff] }
  0x48   :  { %834 = vmatprep.subr.bf16.mxu1 %v1025_v0  ;;  %848 = vmatpush3.bf16.msra.mxu0 %v847_v31  ;;  %v424_v29 = vld [vmem:[#allocation7 + $0x1b0] sm:$0xff]  ;;  %v425_v31 = vld [vmem:[#allocation7 + $0x1b8] sm:$0xff]  ;;  %v426_v32 = vld [vmem:[#allocation7 + $0x1c0] sm:$0xff] }
  0x49   :  { %849 = vmatprep.subr.bf16.mxu0 %v1025_v0  ;;  %v904_v33 = vpack.c.bf16 %v426_v32, %v425_v31  ;;  %v619_v34 = vld [vmem:[%s1182_s5 + $0x1] ss:$0 sm:$0xff]  ;;  %v427_v39 = vld [vmem:[#allocation7 + $0x1c8] sm:$0xff] }
  0x4a   :  { %v61_v12 = vld [vmem:[%s1178_s1] sm:$0xff] }
  0x4b   :  { %836 = vmatpush3.bf16.msra.mxu1 %v835_v27  ;;  %v898_v27 = vpack.c.bf16 %v422_v26, %v421_v25 }
  0x4c   :  { %861 = vmatprep.subr.bf16.mxu1 %v1025_v0  ;;  %851 = vmatpush3.bf16.msra.mxu0 %v850_v35 }
  0x4d   :  { %852 = vmatprep.subr.bf16.mxu0 %v1025_v0 }
  0x4e   :  { %715 = vmatmul.mubr.msk.f32.vlgmr.msra.gmra.mrb[2].mxu1 %vm149_vm2, %v62_v28  ;;  %v423_v28 = vld [vmem:[#allocation7 + $0x1a8] sm:$0xff] }
  0x4f   :  { %784 = vmatprep.mubr.msk.f32.mxu1 %vm1026_vm0, %v1027_v1  ;;  %863 = vmatpush3.bf16.msra.mxu1 %v862_v47  ;;  %v901_v30 = vpack.c.bf16 %v424_v29, %v423_v28 }
  0x50   :  { %854 = vmatpush3.bf16.msra.mxu0 %v853_v37  ;;  %864 = vmatprep.subr.bf16.mxu1 %v1025_v0 }
  0x51   :  { %855 = vmatprep.subr.bf16.mxu0 %v1025_v0 }
  0x53   :  { %866 = vmatpush3.bf16.msra.mxu1 %v865_v49 }
  0x54   :  { %857 = vmatpush3.bf16.msra.mxu0 %v856_v40  ;;  %867 = vmatprep.subr.bf16.mxu1 %v1025_v0  ;;  %v428_v40 = vld [vmem:[#allocation7 + $0x1d0] sm:$0xff] }
  0x55   :  { %858 = vmatprep.subr.bf16.mxu0 %v1025_v0  ;;  %v907_v41 = vpack.c.bf16 %v428_v40, %v427_v39 }
  0x57   :  { %869 = vmatpush3.bf16.msra.mxu1 %v868_v52 }
  0x58   :  { %860 = vmatpush3.bf16.msra.mxu0 %v859_v43  ;;  %870 = vmatprep.subr.bf16.mxu1 %v1025_v0  ;;  %v622_v43 = vmul.f32 -1.442695, %v505_v42 }
  0x59   :  { %885 = vmatprep.subr.bf16.mxu0 %v1025_v0 }
  0x5a   :  { %920 = vpow2.f32 %v622_v43 }
  0x5b   :  { %872 = vmatpush3.bf16.msra.mxu1 %v871_v55 }
  0x5c   :  { %873 = vmatprep.subr.bf16.mxu1 %v1025_v0 }
  0x5f   :  { %875 = vmatpush3.bf16.msra.mxu1 %v874_v58 }
  0x60   :  { %876 = vmatprep.subr.bf16.mxu1 %v1025_v0 }
  0x63   :  { %878 = vmatpush3.bf16.msra.mxu1 %v877_v61 }
  0x64   :  { %879 = vmatprep.subr.bf16.mxu1 %v1025_v0  ;;  %v921_v48 = vpop.eup %920 }
  0x65   :  { %v509_v49 = vadd.f32 1.0, %v921_v48 }
  0x67   :  { %881 = vmatpush3.bf16.msra.mxu1 %v880_v2 }
  0x68   :  { %882 = vmatprep.subr.bf16.mxu1 %v1025_v0 }
  0x6b   :  { %884 = vmatpush3.bf16.msra.mxu1 %v883_v13  ;;  %v623_v13 = vmul.f32 -1.442695, %v61_v12 }
 0x115   :  { %v145_v3 = vpop.f32.mrb[0].mxu1 }
 0x116   :  { %v701_v4 = vpop.f32.mrb[1].mxu1 }
 0x121   :  { %v219_v5 = vpop.f32.mrb[2].mxu1 }
 0x122   :  { %v220_v7 = vadd.f32 %v219_v5, %v145_v3  ;;  %v716_v8 = vpop.f32.mrb[3].mxu1 }
 0x124   :  { %v228_v9 = vadd.f32 %v618_v6, %v220_v7 }
 0x126   :  { %v229_v10 = vmax.f32 %v228_v9, 0.0 }
 0x128   :  { %750 = vmatmul.mubr.f32.vlgmr.msra.gmra.mrb[0].mxu0 %v229_v10 }
 0x129   :  { %819 = vmatprep.mubr.msk.f32.mxu0 %vm1026_vm0, %v1027_v1  ;;  %887 = vmatpush3.bf16.msra.mxu0 %v886_v17  ;;  %v419_v1 = vld [vmem:[#allocation7 + $0x188] sm:$0xff] }
 0x12a   :  { %888 = vmatprep.subr.bf16.mxu0 %v1025_v0  ;;  %v895_v24 = vpack.c.bf16 %v420_v23, %v419_v1 }
 0x12d   :  { %890 = vmatpush3.bf16.msra.mxu0 %v889_v19 }
 0x12e   :  { %891 = vmatprep.subr.bf16.mxu0 %v1025_v0 }
 0x131   :  { %893 = vmatpush3.bf16.msra.mxu0 %v892_v22 }
 0x132   :  { %894 = vmatprep.subr.bf16.mxu0 %v1025_v0 }
 0x135   :  { %896 = vmatpush3.bf16.msra.mxu0 %v895_v24 }
 0x136   :  { %897 = vmatprep.subr.bf16.mxu0 %v1025_v0 }
 0x139   :  { %899 = vmatpush3.bf16.msra.mxu0 %v898_v27 }
 0x13a   :  { %900 = vmatprep.subr.bf16.mxu0 %v1025_v0 }
 0x13d   :  { %902 = vmatpush3.bf16.msra.mxu0 %v901_v30 }
 0x13e   :  { %903 = vmatprep.subr.bf16.mxu0 %v1025_v0 }
 0x141   :  { %905 = vmatpush3.bf16.msra.mxu0 %v904_v33 }
 0x142   :  { %906 = vmatprep.subr.bf16.mxu0 %v1025_v0  ;;  %v620_v0 = vld [vmem:[%s1182_s5 + $0x2] ss:$0 sm:$0xff] }
 0x145   :  { %908 = vmatpush3.bf16.msra.mxu0 %v907_v41 }
 0x1fb   :  { %v317_v35 = vpop.f32.mrb[0].mxu0 }
 0x1fc   :  { %v318_v36 = vadd.f32 %v619_v34, %v317_v35  ;;  %v751_v37 = vpop.f32.mrb[1].mxu0 }
 0x1fe   :  { %v321_v38 = vmax.f32 %v318_v36, 0.0 }
 0x200   :  { %785 = vmatmul.mubr.f32.vlgmr.msra.gmra.mrb[4].mxu1 %v321_v38 }
 0x2d3   :  { %v409_v44 = vpop.f32.mrb[4].mxu1 }
 0x2d4   :  { %v410_v45 = vadd.f32 %v620_v0, %v409_v44  ;;  %v786_v46 = vpop.f32.mrb[5].mxu1 }
 0x2d6   :  { %v624_v47 = vmul.f32 -1.442695, %v410_v45  ;;  %820 = vmatmul.mubr.f32.vlgmr.msra.gmra.mrb[2].mxu0 %v410_v45 }
 0x2d8   :  { %922 = vpow2.f32 %v624_v47 }
 0x2d9   :  { %924 = vrcp.f32 %v509_v49 }
 0x2e2   :  { %v923_v50 = vpop.eup %922 }
 0x2e3   :  { %v521_v51 = vadd.f32 1.0, %v923_v50  ;;  %v925_v52 = vpop.eup %924 }
 0x2e4   :  { %v570_v53 = vmul.f32 %v925_v52, %v925_v52 }
 0x2e5   :  { %926 = vrcp.f32 %v521_v51 }
 0x2ef   :  { %v927_v54 = vpop.eup %926 }
 0x2f0   :  { %525 = vrot.lane.b32.xlu0 %v927_v54, %s1028_s0  ;;  %v574_v55 = vmul.f32 %v927_v54, %v570_v53  ;;  %v571_v56 = vmul.f32 %v927_v54, %v925_v52 }
 0x2f2   :  { %928 = vrsqrt.f32 %v574_v55  ;;  %v572_v57 = vmul.f32 2.0, %v571_v56  ;;  %vm581_vm3 = vcmp.eq.f32.partialorder %v574_v55, inf  ;;  %v584_v62 = vand.u32 2147483648, %v574_v55 }
 0x2f3   :  { %vm583_vm4 = vcmp.eq.f32.partialorder %v574_v55, 0.0 }
 0x2f4   :  { %v573_v58 = vadd.f32 %v572_v57, %v570_v53 }
 0x2f6   :  { %v575_v60 = vadd.f32 5e-11, %v573_v58 }
 0x2f8   :  { %930 = vlog2.f32 %v575_v60 }
 0x2fc   :  { %v929_v59 = vpop.eup %928 }
 0x2fd   :  { %v580_v61 = vmul.f32 %v929_v59, %v574_v55 }
 0x2ff   :  { %v582_v63 = vsel %vm581_vm3, %v574_v55, %v580_v61 }
 0x300   :  { %v585_v2 = vsel %vm583_vm4, %v584_v62, %v582_v63 }
 0x301   :  { %v586_v3 = vmul.f32 %v585_v2, %v574_v55  ;;  %v621_v55 = vld [vmem:[%s1182_s5 + $0x3] ss:$0 sm:$0xff] }
 0x302   :  { %v931_v5 = vpop.eup %930 }
 0x303   :  { %v587_v4 = vadd.f32 5e-11, %v586_v3  ;;  %v577_v6 = vmul.f32 0.6931472, %v931_v5 }
 0x305   :  { %932 = vlog2.f32 %v587_v4  ;;  %v578_v9 = vmul.f32 0.4, %v577_v6 }
 0x306   :  { %934 = vpow2.f32 %v623_v13 }
 0x30f   :  { %v933_v7 = vpop.eup %932 }
 0x310   :  { %v589_v8 = vmul.f32 0.6931472, %v933_v7  ;;  %v935_v14 = vpop.eup %934 }
 0x311   :  { %v515_v15 = vadd.f32 1.0, %v935_v14 }
 0x312   :  { %v590_v10 = vmul.f32 0.4, %v589_v8 }
 0x313   :  { %936 = vrcp.f32 %v515_v15 }
 0x314   :  { %v591_v11 = vadd.f32 %v590_v10, %v578_v9 }
 0x316   :  { %609 = vst.msk [vmem:[%s1183_s6 + $0x8] sm:$0xff] %vm592_vm5, %v591_v11 }
 0x31d   :  { %v937_v16 = vpop.eup %936 }
 0x362   :  { %v526_v17 = vpop.permute.xlu0 %525 }
 0x363   :  { %v529_v18 = vmul.f32 %v927_v54, %v526_v17  ;;  %v528_v21 = vadd.f32 %v927_v54, %v526_v17 }
 0x365   :  { %v532_v19 = vmul.f32 %v937_v16, %v529_v18  ;;  %v552_v20 = vmul.f32 %v925_v52, %v529_v18  ;;  %v530_v22 = vmul.f32 %v937_v16, %v528_v21  ;;  %v550_v1 = vmul.f32 %v925_v52, %v528_v21 }
 0x367   :  { %938 = vrsqrt.f32 %v532_v19  ;;  %v531_v23 = vadd.f32 %v530_v22, %v529_v18  ;;  %v551_v24 = vadd.f32 %v550_v1, %v529_v18  ;;  %vm539_vm6 = vcmp.eq.f32.partialorder %v532_v19, inf }
 0x368   :  { %940 = vrsqrt.f32 %v552_v20  ;;  %v542_v30 = vand.u32 2147483648, %v532_v19  ;;  %vm541_vm7 = vcmp.eq.f32.partialorder %v532_v19, 0.0  ;;  %vm559_vm8 = vcmp.eq.f32.partialorder %v552_v20, inf }
 0x369   :  { %v533_v27 = vadd.f32 5e-11, %v531_v23  ;;  %v553_v29 = vadd.f32 5e-11, %v551_v24  ;;  %v562_v33 = vand.u32 2147483648, %v552_v20  ;;  %vm561_vm9 = vcmp.eq.f32.partialorder %v552_v20, 0.0 }
 0x36b   :  { %942 = vlog2.f32 %v533_v27 }
 0x36c   :  { %944 = vlog2.f32 %v553_v29 }
 0x371   :  { %v939_v25 = vpop.eup %938 }
 0x372   :  { %v941_v26 = vpop.eup %940  ;;  %v538_v28 = vmul.f32 %v939_v25, %v532_v19 }
 0x373   :  { %v558_v31 = vmul.f32 %v941_v26, %v552_v20 }
 0x374   :  { %v540_v32 = vsel %vm539_vm6, %v532_v19, %v538_v28 }
 0x375   :  { %v543_v34 = vsel %vm541_vm7, %v542_v30, %v540_v32  ;;  %v560_v35 = vsel %vm559_vm8, %v552_v20, %v558_v31  ;;  %v943_v41 = vpop.eup %942 }
 0x376   :  { %v544_v36 = vmul.f32 %v543_v34, %v532_v19  ;;  %v563_v37 = vsel %vm561_vm9, %v562_v33, %v560_v35  ;;  %v945_v42 = vpop.eup %944  ;;  %v535_v43 = vmul.f32 0.6931472, %v943_v41 }
 0x377   :  { %v564_v38 = vmul.f32 %v563_v37, %v552_v20  ;;  %v555_v44 = vmul.f32 0.6931472, %v945_v42 }
 0x378   :  { %v545_v39 = vadd.f32 5e-11, %v544_v36  ;;  %v536_v48 = vmul.f32 0.4, %v535_v43 }
 0x379   :  { %v565_v40 = vadd.f32 5e-11, %v564_v38  ;;  %v556_v50 = vmul.f32 0.4, %v555_v44 }
 0x37a   :  { %946 = vlog2.f32 %v545_v39 }
 0x37b   :  { %948 = vlog2.f32 %v565_v40 }
 0x384   :  { %v947_v0 = vpop.eup %946 }
 0x385   :  { %v949_v45 = vpop.eup %948  ;;  %v547_v46 = vmul.f32 0.6931472, %v947_v0 }
 0x386   :  { %v567_v47 = vmul.f32 0.6931472, %v949_v45 }
 0x387   :  { %v548_v49 = vmul.f32 0.4, %v547_v46 }
 0x388   :  { %v568_v51 = vmul.f32 0.4, %v567_v47 }
 0x389   :  { %v549_v52 = vadd.f32 %v548_v49, %v536_v48 }
 0x38a   :  { %v569_v53 = vadd.f32 %v568_v51, %v556_v50 }
 0x38b   :  { %593 = vst.msk [vmem:[%s1183_s6] sm:$0xff] %vm592_vm5, %v549_v52 }
 0x38c   :  { %v594_v54 = vsub.f32 %v549_v52, %v569_v53 }
 0x38e   :  { %596 = vrot.lane.b32.xlu0 %v594_v54, %s1029_s20 }
 0x3a9   :  { %v500_v56 = vpop.f32.mrb[2].mxu0 }
 0x3aa   :  { %v501_v57 = vadd.f32 %v621_v55, %v500_v56  ;;  %v821_v58 = vpop.f32.mrb[3].mxu0 }
 0x3ac   :  { %602 = vrot.lane.b32.xlu1 %v501_v57, %s1030_s23 }
 0x400   :  { %v597_v59 = vpop.permute.xlu0 %596 }
 0x401   :  { %600 = vst.msk [vmem:[%s1183_s6] sm:$0xff] %vm599_vm10, %v597_v59 }
 0x41e   :  { %v603_v60 = vpop.permute.xlu1 %602 }
 0x41f   :  { %606 = vst.msk [vmem:[%s1183_s6] sm:$0xff] %vm605_vm11, %v603_v60 }
 0x420   :  { %608 = vst.msk [vmem:[%s1183_s6] sm:$0xff] %vm607_vm12, %v603_v60 }
 0x421   :  { %614 = vsyncpa [#allocation4], 1 }
 0x422   :  { %615 = vsyncpa [#allocation6], 1 }

</bundles_post_ra>
